<compile_context>
chip_gen: v7x
topology: tpu7x:2x2x1
jax: 0.10.0
libtpu: 0.0.40
codegen_flags: <defaults>
</compile_context>

<pallas_src>
import functools

import jax
import jax.numpy as jnp
from jax.experimental import pallas as pl
from jax.experimental.pallas import tpu as pltpu


def _round_up(x, m):
    return (x + m - 1) // m * m


def _patchify_kernel(x_ref, w_ref, b_ref, o_ref):
    # x_ref: (TM, Kp) bf16   patch rows
    # w_ref: (Kp, Dp) bf16   flattened conv weight (transposed), resident
    # b_ref: (1,  Dp) f32    bias, resident
    # o_ref: (TM, Dp) f32
    acc = jnp.dot(x_ref[...], w_ref[...], preferred_element_type=jnp.float32)
    acc = acc + b_ref[...]                       # f32 bias add / epilogue
    o_ref[...] = acc.astype(o_ref.dtype)


def patchify_forward(x, weight, bias, patch_size, *, tile_m=512):
    """x: (B, C, H, W). weight: (D, C, p, p). bias: (D,).

    Returns (B, num_patches, D), equal (up to bf16 rounding of the matmul
    operands) to Conv2d(C, D, p, stride=p)(x).flatten(2).transpose(1, 2).
    """
    B, C, H, W = x.shape
    p = patch_size
    assert H % p == 0 and W % p == 0, "spatial dims must be divisible by patch_size"
    D = weight.shape[0]
    Gh, Gw = H // p, W // p
    N = Gh * Gw
    K = C * p * p
    M = B * N

    Kp = _round_up(K, 128)                       # lane-dense contraction dim
    Dp = _round_up(D, 128)                       # lane-dense output dim
    TM = tile_m if M >= tile_m else _round_up(M, 8)
    Mp = _round_up(M, TM)

    # --- Glue: patch extraction + pad + bf16 cast (layout only; candidate
    # for XLA fusion into the kernel input DMA via allow_input_fusion). ---
    xp = x.reshape(B, C, Gh, p, Gw, p)
    xp = xp.transpose(0, 2, 4, 1, 3, 5).reshape(M, K)     # (B*N, C*p*p)
    xp = xp.astype(jnp.bfloat16)
    if (Mp, Kp) != (M, K):
        xp = jnp.pad(xp, ((0, Mp - M), (0, Kp - K)))

    w2d = weight.reshape(D, K).T.astype(jnp.bfloat16)     # (K, D)
    if (Kp, Dp) != (K, D):
        w2d = jnp.pad(w2d, ((0, Kp - K), (0, Dp - D)))
    b2d = bias.astype(jnp.float32).reshape(1, D)
    if Dp != D:
        b2d = jnp.pad(b2d, ((0, 0), (0, Dp - D)))

    out_dtype = x.dtype
    cost = pl.CostEstimate(
        flops=2 * Mp * Kp * Dp,
        transcendentals=0,
        bytes_accessed=(Mp * Kp * 2 + Kp * Dp * 2 + Dp * 4
                        + Mp * Dp * jnp.dtype(out_dtype).itemsize),
    )

    out = pl.pallas_call(
        _patchify_kernel,
        out_shape=jax.ShapeDtypeStruct((Mp, Dp), out_dtype),
        grid_spec=pltpu.PrefetchScalarGridSpec(
            num_scalar_prefetch=0,
            grid=(Mp // TM,),
            in_specs=[
                pl.BlockSpec((TM, Kp), lambda m: (m, 0)),   # streaming patch rows
                pl.BlockSpec((Kp, Dp), lambda m: (0, 0)),   # resident weight
                pl.BlockSpec((1, Dp), lambda m: (0, 0)),    # resident bias
            ],
            out_specs=pl.BlockSpec((TM, Dp), lambda m: (m, 0)),
        ),
        compiler_params=pltpu.CompilerParams(
            dimension_semantics=("parallel",),
            vmem_limit_bytes=48 * 1024 * 1024,
            allow_input_fusion=[True, False, False],
        ),
        cost_estimate=cost,
    )(xp, w2d, b2d)

    return out[:M, :D].reshape(B, N, D)


def init_patchify_params(key, in_channels, out_channels, patch_size):
    """Deterministic xavier_uniform on the flattened weight, zero bias
    (mirrors Patchify.initialize_weights)."""
    D = out_channels
    K = in_channels * patch_size * patch_size
    limit = (6.0 / (D + K)) ** 0.5
    w_flat = jax.random.uniform(key, (D, K), jnp.float32, -limit, limit)
    weight = w_flat.reshape(D, in_channels, patch_size, patch_size)
    bias = jnp.zeros((D,), jnp.float32)
    return weight, bias


if __name__ == "__main__":
    B, C, H, W = 2, 4, 16, 16
    patch_size = 4
    out_channels = 32

    key = jax.random.PRNGKey(0)
    k_x, k_w = jax.random.split(key)

    x = jax.random.normal(k_x, (B, C, H, W), jnp.float32)
    weight, bias = init_patchify_params(k_w, C, out_channels, patch_size)

    fwd = jax.jit(functools.partial(patchify_forward, patch_size=patch_size))
    out = fwd(x, weight, bias)
    out = jax.block_until_ready(out)

    # Reference check against lax conv (same semantics as nn.Conv2d stride=p).
    ref = jax.lax.conv_general_dilated(
        x, weight, window_strides=(patch_size, patch_size), padding="VALID",
        dimension_numbers=("NCHW", "OIHW", "NCHW"))
    ref = ref + bias[None, :, None, None]
    ref = ref.reshape(B, out_channels, -1).transpose(0, 2, 1)   # flatten(2).transpose(1,2)

    assert out.shape == (B, (H // patch_size) * (W // patch_size), out_channels)
    # bf16 MXU operands with f32 accumulation -> loosened tolerance vs f32 ref.
    assert jnp.allclose(out, ref, atol=5e-2, rtol=5e-2), float(
        jnp.max(jnp.abs(out - ref)))

    print("KERNEL_OK")
</pallas_src>

<mosaic_0001>
module attributes {stable_mosaic.version = 11 : i64} {
  func.func @_patchify_kernel(%arg0: i32, %arg1: memref<32x128xbf16, #tpu.memory_space<vmem>>, %arg2: memref<128x128xbf16, #tpu.memory_space<vmem>>, %arg3: memref<1x128xf32, #tpu.memory_space<vmem>>, %arg4: memref<32x128xf32, #tpu.memory_space<vmem>>) attributes {dimension_semantics = [#tpu.dimension_semantics<parallel>], iteration_bounds = array<i64: 1>, scalar_prefetch = 0 : i64, scratch_operands = 0 : i64, tpu.core_type = #tpu.core_type<tc>, window_params = [{transform_indices = @transform_0, window_bounds = array<i64: 32, 128>}, {pipeline_mode = #tpu.pipeline_mode<synchronous>, transform_indices = @transform_1, window_bounds = array<i64: 128, 128>}, {pipeline_mode = #tpu.pipeline_mode<synchronous>, transform_indices = @transform_2, window_bounds = array<i64: 1, 128>}, {transform_indices = @transform_3, window_bounds = array<i64: 32, 128>}]} {
    %c0 = arith.constant 0 : index
    %c0_0 = arith.constant 0 : index
    %0 = vector.load %arg1[%c0, %c0_0] : memref<32x128xbf16, #tpu.memory_space<vmem>>, vector<32x128xbf16>
    %c0_1 = arith.constant 0 : index
    %c0_2 = arith.constant 0 : index
    %1 = vector.load %arg2[%c0_1, %c0_2] : memref<128x128xbf16, #tpu.memory_space<vmem>>, vector<128x128xbf16>
    %cst = arith.constant dense<0.000000e+00> : vector<32x128xf32>
    %2 = tpu.matmul %0, %1, %cst {dimension_numbers = #tpu.dot_dimension_numbers<[1], [0], [0], [1], [0, 0, 1, 1], [], []>} : vector<32x128xbf16>, vector<128x128xbf16>, vector<32x128xf32> -> vector<32x128xf32>
    %c0_3 = arith.constant 0 : index
    %c0_4 = arith.constant 0 : index
    %3 = vector.load %arg3[%c0_3, %c0_4] : memref<1x128xf32, #tpu.memory_space<vmem>>, vector<1x128xf32>
    %4 = vector.broadcast %3 : vector<1x128xf32> to vector<32x128xf32>
    %5 = arith.addf %2, %4 : vector<32x128xf32>
    %c0_5 = arith.constant 0 : index
    %c0_6 = arith.constant 0 : index
    %6 = vector.load %arg4[%c0_5, %c0_6] : memref<32x128xf32, #tpu.memory_space<vmem>>, vector<32x128xf32>
    tpu.vector_store %arg4[%c0_5, %c0_6], %5 {strides = array<i32>} : memref<32x128xf32, #tpu.memory_space<vmem>>, vector<32x128xf32>,
    return
  }
  func.func @transform_0(%arg0: i32) -> (i32, i32) {
    %c0_i32 = arith.constant 0 : i32
    %c0_i32_0 = arith.constant 0 : i32
    return %arg0, %c0_i32 : i32, i32
  }
  func.func @transform_1(%arg0: i32) -> (i32, i32) {
    %c0_i32 = arith.constant 0 : i32
    %c0_i32_0 = arith.constant 0 : i32
    %c0_i32_1 = arith.constant 0 : i32
    return %c0_i32, %c0_i32_0 : i32, i32
  }
  func.func @transform_2(%arg0: i32) -> (i32, i32) {
    %c0_i32 = arith.constant 0 : i32
    %c0_i32_0 = arith.constant 0 : i32
    %c0_i32_1 = arith.constant 0 : i32
    return %c0_i32, %c0_i32_0 : i32, i32
  }
  func.func @transform_3(%arg0: i32) -> (i32, i32) {
    %c0_i32 = arith.constant 0 : i32
    %c0_i32_0 = arith.constant 0 : i32
    return %arg0, %c0_i32 : i32, i32
  }
}

</mosaic_0001>

<bundles_post_ra>
// kernel: patchify_forward.2
= control target key start
LH: loop header
LB: loop body
LE: loop exit
PB: predicated region body
PF: predicated region fallthrough
CT: control target
= control target key end

     0   :  { %s423_s0 = inlined_call_operand.vmem [shape: bf16[128,128], index: 0, kind: input, shape index: {}]   ;;  %s424_s1 = inlined_call_operand.vmem [shape: f32[1,128], index: 1, kind: input, shape index: {}]   ;;  %s425_s2 = inlined_call_operand.vmem [shape: bf16[32,64], index: 2, kind: input, shape index: {}]   ;;  %s426_s3 = inlined_call_operand.<no memory space> [shape: bf16[], index: 3, kind: input, shape index: {}]   ;;  %s427_s4 = inlined_call_operand.hbm [shape: f32[32,128], index: 4, kind: output, shape index: {}]  }
   0x1   :  { %v9_v0 = vstv %s426_s3 }
   0x2   :  { %v10_v1 = vunpack.i.l.bf16 %v9_v0 }
   0x3   :  { %v312_v2 = vld [vmem:[%s423_s0] sm:$0xff]   ;;  %v33_v3 = vlaneseq  ;;  %v313_v4 = vld [vmem:[%s423_s0 + $0x8] sm:$0xff]   ;;  %v314_v5 = vld [vmem:[%s423_s0 + $0x10] sm:$0xff]  }
   0x4   :  { %288 = vmatprep.subr.bf16.mxu0 %v312_v2  ;;  %v315_v7 = vld [vmem:[%s423_s0 + $0x18] sm:$0xff]   ;;  %v30_v8 = vld [vmem:[%s425_s2] sm:$0xff]   ;;  %v265_v9 = vld [vmem:[%s425_s2 + $0x8] sm:$0xff]  }
   0x5   :  { %289 = vmatpush3.bf16.msra.mxu0 %v312_v2  ;;  %v34_v6 = vand.u32 127, %v33_v3 }
   0x6   :  { %290 = vmatprep.subr.bf16.mxu0 %v313_v4 }
   0x7   :  { %vm36_vm0 = vcmp.lt.s32.totalorder %v34_v6, 64 }
   0x9   :  { %291 = vmatpush3.bf16.msra.mxu0 %v313_v4 }
   0xa   :  { %292 = vmatprep.subr.bf16.mxu0 %v314_v5 }
   0xb   :  { %14 = vsyncpa [#allocation8], 0  ;;  %v31_v10 = vunpack.c.l.bf16 %v30_v8  ;;  %v52_v11 = vunpack.c.h.bf16 %v30_v8  ;;  %v74_v12 = vunpack.c.l.bf16 %v265_v9  ;;  %v96_v13 = vunpack.c.h.bf16 %v265_v9  ;;  %v316_v18 = vld [vmem:[%s423_s0 + $0x20] sm:$0xff]   ;;  %v317_v24 = vld [vmem:[%s423_s0 + $0x28] sm:$0xff]   ;;  %s347_s11 = smov [#allocation7]  }
   0xc   :  { %v346_v19 = vmov 0.0   ;;  %v318_v25 = vld [vmem:[%s423_s0 + $0x30] sm:$0xff]   ;;  %v319_v27 = vld [vmem:[%s423_s0 + $0x38] sm:$0xff]   ;;  %v267_v29 = vld [vmem:[%s424_s1] ss:$0 sm:$0xff]  ;;  %s253_s12 = sshll.u32 %s347_s11, 4  ;;  %s254_s12 = int_to_ptr.vmem [resolvable:$true] %s253_s12 }
   0xd   :  { %293 = vmatpush3.bf16.msra.mxu0 %v314_v5  ;;  %v37_v14 = vsel %vm36_vm0, %v31_v10, %v10_v1  ;;  %v58_v15 = vsel %vm36_vm0, %v52_v11, %v10_v1  ;;  %v80_v16 = vsel %vm36_vm0, %v74_v12, %v10_v1  ;;  %v102_v17 = vsel %vm36_vm0, %v96_v13, %v10_v1  ;;  %s322_s0 = scalar_lea.vmem %s254_s12, 512  ;;  %p327_p1 = scmp.lt.s32.totalorder %s254_s12, %s254_s12 }
   0xe   :  { %294 = vmatprep.subr.bf16.mxu0 %v315_v7  ;;  %v38_v20 = vpack.c.bf16 %v346_v19, %v37_v14  ;;  %v60_v21 = vpack.c.bf16 %v346_v19, %v58_v15  ;;  %v82_v22 = vpack.c.bf16 %v346_v19, %v80_v16  ;;  %v104_v23 = vpack.c.bf16 %v346_v19, %v102_v17  ;;  %p323_p0 = scmp.ne.s32.totalorder %s254_s12, %s322_s0  ;;  %p328_p2 = scmp.lt.s32.totalorder %s322_s0, %s322_s0 }
  0x10   :  { %40 = vst [vmem:[#allocation9] sm:$0xf] %v38_v20  ;;  %62 = vst [vmem:[#allocation9 + $0x4] sm:$0xf] %v60_v21  ;;  %p329_p3 = por %p328_p2, %p327_p1 }
  0x11   :  { %84 = vst [vmem:[#allocation9 + $0x8] sm:$0xf] %v82_v22  ;;  %106 = vst [vmem:[#allocation9 + $0xc] sm:$0xf] %v104_v23  ;;  %295 = vmatpush3.bf16.msra.mxu0 %v315_v7 }
  0x12   :  { %296 = vmatprep.subr.bf16.mxu0 %v316_v18  ;;  %p330_p4 = pnand %p329_p3, %p323_p0 }
  0x15   :  { %297 = vmatpush3.bf16.msra.mxu0 %v316_v18 }
  0x16   :  { %298 = vmatprep.subr.bf16.mxu0 %v317_v24 }
  0x17   :  { %v320_v26 = vld [vmem:[#allocation9] sm:$0xff]  }
  0x18   :  { %304 = vmatprep.mubr.bf16.mxu0 %v320_v26  ;;  %v321_v28 = vld [vmem:[#allocation9 + $0x8] sm:$0xff]  }
  0x19   :  { %299 = vmatpush3.bf16.msra.mxu0 %v317_v24 }
  0x1a   :  { %300 = vmatprep.subr.bf16.mxu0 %v318_v25 }
  0x1d   :  { %301 = vmatpush3.bf16.msra.mxu0 %v318_v25 }
  0x1e   :  { %302 = vmatprep.subr.bf16.mxu0 %v319_v27 }
  0x21   :  { %303 = vmatpush3.bf16.msra.mxu0 %v319_v27 }
  0x24   :  { %305 = vmatmul.mubr.bf16.vlgmr.msra.gmra.mrb[0].mxu0 %v321_v28 }
  0xf7   :  { %v306_v30 = vpop.f32.mrb[0].mxu0 }
  0xf8   :  { %v238_v31 = vadd.f32 %v306_v30, %v267_v29  ;;  %v229_v32 = vpop.f32.mrb[1].mxu0 }
  0xf9   :  { %v230_v33 = vadd.f32 %v267_v29, %v229_v32  ;;  %v307_v34 = vpop.f32.mrb[2].mxu0 }
  0xfa   :  { %246 = vst [vmem:[#allocation7 + $0x10] sm:$0xff] %v238_v31  ;;  %v241_v35 = vadd.f32 %v307_v34, %v267_v29  ;;  %v232_v36 = vpop.f32.mrb[3].mxu0 }
  0xfb   :  { %244 = vst [vmem:[#allocation7] sm:$0xff] %v230_v33  ;;  %v233_v37 = vadd.f32 %v267_v29, %v232_v36 }
  0xfc   :  { %247 = vst [vmem:[#allocation7 + $0x18] sm:$0xff] %v241_v35 }
  0xfd   :  { %245 = vst [vmem:[#allocation7 + $0x8] sm:$0xff] %v233_v37 }
  0xfe   :  { %333 = shalt.err (!%p330_p4)
}
  0xff   :  { %s334_s14 = scalar_lea.hbm %s427_s4, 512 }
 0x100   :  { %p335_p5 = scmp.ne.s32.totalorder %s427_s4, %s334_s14  ;;  %p338_p6 = scmp.lt.u32.totalorder %s334_s14, %s427_s4 }
 0x102   :  { %p340_p7 = pnand %p338_p6, %p335_p5 }
 0x104   :  { %343 = shalt.err (!%p340_p7)
}
 0x105   :  { %s348_s19 = smov 128   ;;  %s349_s20 = smov 8  }
 0x106   :  { %259 = dma.vmem_to_hbm [thread:$0]  %s254_s12, 512, %s427_s4, [#allocation8], %s348_s19, %s348_s19, %s349_s20  }
 0x107   :  { %344 = dma.done.wait [#allocation8], 512  }
 0x108   :  { %345 = vsyncadd [#allocation8], 4294966784 }
 0x109   :  { %263 = vsyncpa [#allocation8], 1 }

</bundles_post_ra>
